<compile_context>
chip_gen: v6e
topology: v6e:2x2x1
jax: 0.10.0
libtpu: 0.0.40
codegen_flags: <defaults>
</compile_context>

<pallas_src>
import jax
import jax.numpy as jnp
from jax.experimental import pallas as pl
from jax.experimental.pallas import tpu as pltpu


def _round_up(n, m):
    return ((n + m - 1) // m) * m


def _vmem_cap_bytes():
    """Physical VMEM of the current TPU generation (conservative fallback)."""
    try:
        cap = getattr(pltpu.get_tpu_info(), "vmem_capacity_bytes", None)
        if cap:
            return int(cap)
    except Exception:
        pass
    return 64 << 20  # v7x-sized conservative fallback


def bnn_kernel(x_ref, w1_ref, b1_ref, w2_ref, b2_ref, o_ref):
    """Per batch-tile body: linear -> bias -> ReLU -> linear -> bias.

    Weights are pre-sampled (reparameterization hoisted to the wrapper) and
    pre-transposed (in_features, out_features), so both matmuls hit the MXU
    with bf16 operands and f32 accumulation and no in-kernel transpose.
    """
    h = jnp.dot(x_ref[...], w1_ref[...],
                preferred_element_type=jnp.float32) + b1_ref[...]
    h = jnp.maximum(h, 0.0)
    o_ref[...] = jnp.dot(h.astype(w2_ref.dtype), w2_ref[...],
                         preferred_element_type=jnp.float32) + b2_ref[...]


def bayesian_model_forward(x, params, noise, *, batch_tile=256,
                           matmul_dtype=jnp.bfloat16):
    """x: (B, In) f32.  params/noise hold pre-transposed f32 arrays (see init).

    batch_tile=256 feeds the 256-wide MXUs on v6e/v7x; use 128 on v5e.
    """
    B, IN = x.shape
    IN2, HID = params["w1_mu"].shape
    HID2, OUT = params["w2_mu"].shape
    assert IN == IN2 and HID == HID2

    # ---- Hoisted reparameterization sampling (runs ONCE as a tiny XLA
    #      elementwise op, not once per batch tile inside the kernel). -------
    w1 = params["w1_mu"] + jnp.exp(params["w1_logstd"]) * noise["w1_eps"]
    b1 = params["b1_mu"] + jnp.exp(params["b1_logstd"]) * noise["b1_eps"]
    w2 = params["w2_mu"] + jnp.exp(params["w2_logstd"]) * noise["w2_eps"]
    b2 = params["b2_mu"] + jnp.exp(params["b2_logstd"]) * noise["b2_eps"]

    # ---- Padding: HID/OUT (lane dims of the matmul outputs) go to 128 for
    #      lane-dense unmasked stores; IN only needs a multiple of 8. --------
    IN_p = _round_up(IN, 8)
    HID_p = _round_up(HID, 128)
    OUT_p = _round_up(OUT, 128)
    TB = min(batch_tile, _round_up(B, 8))   # batch tile, multiple of 8
    B_p = _round_up(B, TB)

    def pad2(a, rows, cols, dtype):
        return jnp.pad(
            a, ((0, rows - a.shape[0]), (0, cols - a.shape[1]))).astype(dtype)

    x_p = pad2(x, B_p, IN_p, matmul_dtype)        # bf16 x halves streaming HBM
    w1_p = pad2(w1, IN_p, HID_p, matmul_dtype)    # zero pad -> pad cols inert
    w2_p = pad2(w2, HID_p, OUT_p, matmul_dtype)
    b1_p = pad2(b1, 1, HID_p, jnp.float32)
    b2_p = pad2(b2, 1, OUT_p, jnp.float32)

    grid = (B_p // TB,)
    mm_bytes = jnp.dtype(matmul_dtype).itemsize

    cost = pl.CostEstimate(
        flops=2 * B_p * (IN_p * HID_p + HID_p * OUT_p),
        transcendentals=0,   # sampling exp() hoisted out of the kernel
        bytes_accessed=(B_p * IN_p * mm_bytes + B_p * OUT_p * 4
                        + (IN_p * HID_p + HID_p * OUT_p) * mm_bytes
                        + (HID_p + OUT_p) * 4),
    )

    # Generation-aware VMEM ceiling: ~54 MiB on v7x, ~109 MiB on v5e/v6e.
    vmem_ceiling = int(_vmem_cap_bytes() * 0.85)

    def run(weight_buffers):
        spec_kw = ({"pipeline_mode": pl.Buffered(1)}
                   if weight_buffers == 1 else {})

        def resident(shape):
            # Same block every grid step -> stays VMEM-resident; single
            # buffer when supported (contents never change across the grid).
            return pl.BlockSpec(shape, lambda i: (0, 0), **spec_kw)

        need = (2 * TB * IN_p * mm_bytes                      # x (double buf)
                + 2 * TB * OUT_p * 4                          # out (double buf)
                + weight_buffers * (IN_p * HID_p + HID_p * OUT_p) * mm_bytes
                + weight_buffers * 8 * (HID_p + OUT_p) * 4)   # biases (8-row pad)
        vmem_limit = int(max(16 << 20, min(need + (4 << 20), vmem_ceiling)))

        return pl.pallas_call(
            bnn_kernel,
            out_shape=jax.ShapeDtypeStruct((B_p, OUT_p), jnp.float32),
            grid_spec=pltpu.PrefetchScalarGridSpec(
                num_scalar_prefetch=0,
                grid=grid,
                in_specs=[
                    pl.BlockSpec((TB, IN_p), lambda i: (i, 0)),   # x tile
                    resident((IN_p, HID_p)),                      # w1
                    resident((1, HID_p)),                         # b1
                    resident((HID_p, OUT_p)),                     # w2
                    resident((1, OUT_p)),                         # b2
                ],
                out_specs=pl.BlockSpec((TB, OUT_p), lambda i: (i, 0)),
            ),
            compiler_params=pltpu.CompilerParams(
                # Sampling is hoisted, so the batch axis is cleanly parallel
                # (megacore split on v7x; measured-neutral on v5e/v6e).
                dimension_semantics=("parallel",),
                vmem_limit_bytes=vmem_limit,
            ),
            cost_estimate=cost,
        )(x_p, w1_p, b1_p, w2_p, b2_p)

    try:
        out_padded = run(weight_buffers=1)
    except Exception:
        # Fallback: pl.Buffered(1) not accepted by this jax build -> default
        # double buffering for the resident weight/bias blocks.
        out_padded = run(weight_buffers=2)

    return out_padded[:B, :OUT]


def init_params(key, input_size, hidden_size, output_size):
    """Deterministic init matching BnnLayer.reset_parameters():
       weight_mu ~ kaiming_normal(fan_in, relu) => std = sqrt(2 / fan_in),
       weight_std (log-std) = -5.0, bias_mu = 0, bias_std = -5.0.
       Weights are stored PRE-TRANSPOSED: (in_features, out_features)."""
    k1, k2 = jax.random.split(key)
    w1_mu = jax.random.normal(k1, (input_size, hidden_size), jnp.float32) * jnp.sqrt(
        2.0 / input_size)
    w2_mu = jax.random.normal(k2, (hidden_size, output_size), jnp.float32) * jnp.sqrt(
        2.0 / hidden_size)
    return {
        "w1_mu": w1_mu,
        "w1_logstd": jnp.full((input_size, hidden_size), -5.0, jnp.float32),
        "b1_mu": jnp.zeros((1, hidden_size), jnp.float32),
        "b1_logstd": jnp.full((1, hidden_size), -5.0, jnp.float32),
        "w2_mu": w2_mu,
        "w2_logstd": jnp.full((hidden_size, output_size), -5.0, jnp.float32),
        "b2_mu": jnp.zeros((1, output_size), jnp.float32),
        "b2_logstd": jnp.full((1, output_size), -5.0, jnp.float32),
    }


def sample_noise(key, input_size, hidden_size, output_size):
    # TODO(synk): torch's Normal.rsample RNG stream is not reproduced; standard
    # normal eps is drawn with jax.random (reparameterization math identical).
    k1, k2, k3, k4 = jax.random.split(key, 4)
    return {
        "w1_eps": jax.random.normal(k1, (input_size, hidden_size), jnp.float32),
        "b1_eps": jax.random.normal(k2, (1, hidden_size), jnp.float32),
        "w2_eps": jax.random.normal(k3, (hidden_size, output_size), jnp.float32),
        "b2_eps": jax.random.normal(k4, (1, output_size), jnp.float32),
    }


if __name__ == "__main__":
    B, IN, HID, OUT = 8, 16, 32, 8

    key = jax.random.PRNGKey(0)
    k_x, k_p, k_n = jax.random.split(key, 3)

    x = jax.random.normal(k_x, (B, IN), jnp.float32)
    params = init_params(k_p, IN, HID, OUT)
    noise = sample_noise(k_n, IN, HID, OUT)

    out = bayesian_model_forward(x, params, noise)
    out = jax.block_until_ready(out)
    assert out.shape == (B, OUT)

    # Sampled weights/biases (f32, same noise as the wrapper), pre-transposed.
    w1 = params["w1_mu"] + jnp.exp(params["w1_logstd"]) * noise["w1_eps"]
    b1 = params["b1_mu"] + jnp.exp(params["b1_logstd"]) * noise["b1_eps"]
    w2 = params["w2_mu"] + jnp.exp(params["w2_logstd"]) * noise["w2_eps"]
    b2 = params["b2_mu"] + jnp.exp(params["b2_logstd"]) * noise["b2_eps"]

    # Matched-precision reference (bf16 matmul operands, f32 accumulate).
    md = jnp.bfloat16
    h_ref = jnp.maximum(
        jnp.dot(x.astype(md), w1.astype(md),
                preferred_element_type=jnp.float32) + b1, 0.0)
    ref_matched = jnp.dot(h_ref.astype(md), w2.astype(md),
                          preferred_element_type=jnp.float32) + b2
    assert jnp.allclose(out, ref_matched, atol=1e-4, rtol=1e-4)

    # Full-f32 module-semantics reference — loose (reflects bf16 MXU operands).
    ref_f32 = jnp.maximum(x @ w1 + b1, 0.0) @ w2 + b2
    assert jnp.allclose(out, ref_f32, atol=1e-1, rtol=1e-1)

    print("KERNEL_OK")
</pallas_src>

<mosaic_0001>
module attributes {stable_mosaic.version = 11 : i64} {
  func.func @bnn_kernel(%arg0: i32, %arg1: memref<8x16xbf16, #tpu.memory_space<vmem>>, %arg2: memref<16x128xbf16, #tpu.memory_space<vmem>>, %arg3: memref<1x128xf32, #tpu.memory_space<vmem>>, %arg4: memref<128x128xbf16, #tpu.memory_space<vmem>>, %arg5: memref<1x128xf32, #tpu.memory_space<vmem>>, %arg6: memref<8x128xf32, #tpu.memory_space<vmem>>) attributes {dimension_semantics = [#tpu.dimension_semantics<parallel>], iteration_bounds = array<i64: 1>, scalar_prefetch = 0 : i64, scratch_operands = 0 : i64, tpu.core_type = #tpu.core_type<tc>, window_params = [{transform_indices = @transform_0, window_bounds = array<i64: 8, 16>}, {pipeline_mode = #tpu.pipeline_mode<synchronous>, transform_indices = @transform_1, window_bounds = array<i64: 16, 128>}, {pipeline_mode = #tpu.pipeline_mode<synchronous>, transform_indices = @transform_2, window_bounds = array<i64: 1, 128>}, {pipeline_mode = #tpu.pipeline_mode<synchronous>, transform_indices = @transform_3, window_bounds = array<i64: 128, 128>}, {pipeline_mode = #tpu.pipeline_mode<synchronous>, transform_indices = @transform_4, window_bounds = array<i64: 1, 128>}, {transform_indices = @transform_5, window_bounds = array<i64: 8, 128>}]} {
    %c0 = arith.constant 0 : index
    %c0_0 = arith.constant 0 : index
    %0 = vector.load %arg1[%c0, %c0_0] : memref<8x16xbf16, #tpu.memory_space<vmem>>, vector<8x16xbf16>
    %c0_1 = arith.constant 0 : index
    %c0_2 = arith.constant 0 : index
    %1 = vector.load %arg2[%c0_1, %c0_2] : memref<16x128xbf16, #tpu.memory_space<vmem>>, vector<16x128xbf16>
    %cst = arith.constant dense<0.000000e+00> : vector<8x128xf32>
    %2 = tpu.matmul %0, %1, %cst {dimension_numbers = #tpu.dot_dimension_numbers<[1], [0], [0], [1], [0, 0, 1, 1], [], []>} : vector<8x16xbf16>, vector<16x128xbf16>, vector<8x128xf32> -> vector<8x128xf32>
    %c0_3 = arith.constant 0 : index
    %c0_4 = arith.constant 0 : index
    %3 = vector.load %arg3[%c0_3, %c0_4] : memref<1x128xf32, #tpu.memory_space<vmem>>, vector<1x128xf32>
    %4 = vector.broadcast %3 : vector<1x128xf32> to vector<8x128xf32>
    %5 = arith.addf %2, %4 : vector<8x128xf32>
    %cst_5 = arith.constant 0.000000e+00 : f32
    %6 = vector.broadcast %cst_5 : f32 to vector<8x128xf32>
    %7 = arith.maximumf %5, %6 : vector<8x128xf32>
    %8 = arith.truncf %7 : vector<8x128xf32> to vector<8x128xbf16>
    %c0_6 = arith.constant 0 : index
    %c0_7 = arith.constant 0 : index
    %9 = vector.load %arg4[%c0_6, %c0_7] : memref<128x128xbf16, #tpu.memory_space<vmem>>, vector<128x128xbf16>
    %cst_8 = arith.constant dense<0.000000e+00> : vector<8x128xf32>
    %10 = tpu.matmul %8, %9, %cst_8 {dimension_numbers = #tpu.dot_dimension_numbers<[1], [0], [0], [1], [0, 0, 1, 1], [], []>} : vector<8x128xbf16>, vector<128x128xbf16>, vector<8x128xf32> -> vector<8x128xf32>
    %c0_9 = arith.constant 0 : index
    %c0_10 = arith.constant 0 : index
    %11 = vector.load %arg5[%c0_9, %c0_10] : memref<1x128xf32, #tpu.memory_space<vmem>>, vector<1x128xf32>
    %12 = vector.broadcast %11 : vector<1x128xf32> to vector<8x128xf32>
    %13 = arith.addf %10, %12 : vector<8x128xf32>
    %c0_11 = arith.constant 0 : index
    %c0_12 = arith.constant 0 : index
    %14 = vector.load %arg6[%c0_11, %c0_12] : memref<8x128xf32, #tpu.memory_space<vmem>>, vector<8x128xf32>
    tpu.vector_store %arg6[%c0_11, %c0_12], %13 {strides = array<i32>} : memref<8x128xf32, #tpu.memory_space<vmem>>, vector<8x128xf32>,
    return
  }
  func.func @transform_0(%arg0: i32) -> (i32, i32) {
    %c0_i32 = arith.constant 0 : i32
    %c0_i32_0 = arith.constant 0 : i32
    return %arg0, %c0_i32 : i32, i32
  }
  func.func @transform_1(%arg0: i32) -> (i32, i32) {
    %c0_i32 = arith.constant 0 : i32
    %c0_i32_0 = arith.constant 0 : i32
    %c0_i32_1 = arith.constant 0 : i32
    return %c0_i32, %c0_i32_0 : i32, i32
  }
  func.func @transform_2(%arg0: i32) -> (i32, i32) {
    %c0_i32 = arith.constant 0 : i32
    %c0_i32_0 = arith.constant 0 : i32
    %c0_i32_1 = arith.constant 0 : i32
    return %c0_i32, %c0_i32_0 : i32, i32
  }
  func.func @transform_3(%arg0: i32) -> (i32, i32) {
    %c0_i32 = arith.constant 0 : i32
    %c0_i32_0 = arith.constant 0 : i32
    %c0_i32_1 = arith.constant 0 : i32
    return %c0_i32, %c0_i32_0 : i32, i32
  }
  func.func @transform_4(%arg0: i32) -> (i32, i32) {
    %c0_i32 = arith.constant 0 : i32
    %c0_i32_0 = arith.constant 0 : i32
    %c0_i32_1 = arith.constant 0 : i32
    return %c0_i32, %c0_i32_0 : i32, i32
  }
  func.func @transform_5(%arg0: i32) -> (i32, i32) {
    %c0_i32 = arith.constant 0 : i32
    %c0_i32_0 = arith.constant 0 : i32
    return %arg0, %c0_i32 : i32, i32
  }
}

module attributes {stable_mosaic.version = 11 : i64} {
  func.func @bnn_kernel(%arg0: i32, %arg1: memref<8x16xbf16, #tpu.memory_space<vmem>>, %arg2: memref<16x128xbf16, #tpu.memory_space<vmem>>, %arg3: memref<1x128xf32, #tpu.memory_space<vmem>>, %arg4: memref<128x128xbf16, #tpu.memory_space<vmem>>, %arg5: memref<1x128xf32, #tpu.memory_space<vmem>>, %arg6: memref<8x128xf32, #tpu.memory_space<vmem>>) attributes {dimension_semantics = [#tpu.dimension_semantics<parallel>], iteration_bounds = array<i64: 1>, scalar_prefetch = 0 : i64, scratch_operands = 0 : i64, tpu.core_type = #tpu.core_type<tc>, window_params = [{transform_indices = @transform_0, window_bounds = array<i64: 8, 16>}, {pipeline_mode = #tpu.pipeline_mode<synchronous>, transform_indices = @transform_1, window_bounds = array<i64: 16, 128>}, {pipeline_mode = #tpu.pipeline_mode<synchronous>, transform_indices = @transform_2, window_bounds = array<i64: 1, 128>}, {pipeline_mode = #tpu.pipeline_mode<synchronous>, transform_indices = @transform_3, window_bounds = array<i64: 128, 128>}, {pipeline_mode = #tpu.pipeline_mode<synchronous>, transform_indices = @transform_4, window_bounds = array<i64: 1, 128>}, {transform_indices = @transform_5, window_bounds = array<i64: 8, 128>}]} {
    %c0 = arith.constant 0 : index
    %c0_0 = arith.constant 0 : index
    %0 = vector.load %arg1[%c0, %c0_0] : memref<8x16xbf16, #tpu.memory_space<vmem>>, vector<8x16xbf16>
    %c0_1 = arith.constant 0 : index
    %c0_2 = arith.constant 0 : index
    %1 = vector.load %arg2[%c0_1, %c0_2] : memref<16x128xbf16, #tpu.memory_space<vmem>>, vector<16x128xbf16>
    %cst = arith.constant dense<0.000000e+00> : vector<8x128xf32>
    %2 = tpu.matmul %0, %1, %cst {dimension_numbers = #tpu.dot_dimension_numbers<[1], [0], [0], [1], [0, 0, 1, 1], [], []>} : vector<8x16xbf16>, vector<16x128xbf16>, vector<8x128xf32> -> vector<8x128xf32>
    %c0_3 = arith.constant 0 : index
    %c0_4 = arith.constant 0 : index
    %3 = vector.load %arg3[%c0_3, %c0_4] : memref<1x128xf32, #tpu.memory_space<vmem>>, vector<1x128xf32>
    %4 = vector.broadcast %3 : vector<1x128xf32> to vector<8x128xf32>
    %5 = arith.addf %2, %4 : vector<8x128xf32>
    %cst_5 = arith.constant 0.000000e+00 : f32
    %6 = vector.broadcast %cst_5 : f32 to vector<8x128xf32>
    %7 = arith.maximumf %5, %6 : vector<8x128xf32>
    %8 = arith.truncf %7 : vector<8x128xf32> to vector<8x128xbf16>
    %c0_6 = arith.constant 0 : index
    %c0_7 = arith.constant 0 : index
    %9 = vector.load %arg4[%c0_6, %c0_7] : memref<128x128xbf16, #tpu.memory_space<vmem>>, vector<128x128xbf16>
    %cst_8 = arith.constant dense<0.000000e+00> : vector<8x128xf32>
    %10 = tpu.matmul %8, %9, %cst_8 {dimension_numbers = #tpu.dot_dimension_numbers<[1], [0], [0], [1], [0, 0, 1, 1], [], []>} : vector<8x128xbf16>, vector<128x128xbf16>, vector<8x128xf32> -> vector<8x128xf32>
    %c0_9 = arith.constant 0 : index
    %c0_10 = arith.constant 0 : index
    %11 = vector.load %arg5[%c0_9, %c0_10] : memref<1x128xf32, #tpu.memory_space<vmem>>, vector<1x128xf32>
    %12 = vector.broadcast %11 : vector<1x128xf32> to vector<8x128xf32>
    %13 = arith.addf %10, %12 : vector<8x128xf32>
    %c0_11 = arith.constant 0 : index
    %c0_12 = arith.constant 0 : index
    %14 = vector.load %arg6[%c0_11, %c0_12] : memref<8x128xf32, #tpu.memory_space<vmem>>, vector<8x128xf32>
    tpu.vector_store %arg6[%c0_11, %c0_12], %13 {strides = array<i32>} : memref<8x128xf32, #tpu.memory_space<vmem>>, vector<8x128xf32>,
    return
  }
  func.func @transform_0(%arg0: i32) -> (i32, i32) {
    %c0_i32 = arith.constant 0 : i32
    %c0_i32_0 = arith.constant 0 : i32
    return %arg0, %c0_i32 : i32, i32
  }
  func.func @transform_1(%arg0: i32) -> (i32, i32) {
    %c0_i32 = arith.constant 0 : i32
    %c0_i32_0 = arith.constant 0 : i32
    %c0_i32_1 = arith.constant 0 : i32
    return %c0_i32, %c0_i32_0 : i32, i32
  }
  func.func @transform_2(%arg0: i32) -> (i32, i32) {
    %c0_i32 = arith.constant 0 : i32
    %c0_i32_0 = arith.constant 0 : i32
    %c0_i32_1 = arith.constant 0 : i32
    return %c0_i32, %c0_i32_0 : i32, i32
  }
  func.func @transform_3(%arg0: i32) -> (i32, i32) {
    %c0_i32 = arith.constant 0 : i32
    %c0_i32_0 = arith.constant 0 : i32
    %c0_i32_1 = arith.constant 0 : i32
    return %c0_i32, %c0_i32_0 : i32, i32
  }
  func.func @transform_4(%arg0: i32) -> (i32, i32) {
    %c0_i32 = arith.constant 0 : i32
    %c0_i32_0 = arith.constant 0 : i32
    %c0_i32_1 = arith.constant 0 : i32
    return %c0_i32, %c0_i32_0 : i32, i32
  }
  func.func @transform_5(%arg0: i32) -> (i32, i32) {
    %c0_i32 = arith.constant 0 : i32
    %c0_i32_0 = arith.constant 0 : i32
    return %arg0, %c0_i32 : i32, i32
  }
}

</mosaic_0001>

<bundles_post_ra>
// kernel: tpu_custom_call.1
= control target key start
LH: loop header
LB: loop body
LE: loop exit
PB: predicated region body
PF: predicated region fallthrough
CT: control target
= control target key end

     0   :  { %10 = vsyncpa [#allocation3], 0  ;;  %s459_s0 = inlined_call_operand.hbm [shape: bf16[8,16], index: 0, kind: input, shape index: {}]   ;;  %s460_s1 = inlined_call_operand.hbm [shape: bf16[16,128], index: 1, kind: input, shape index: {}]   ;;  %s461_s2 = inlined_call_operand.vmem [shape: f32[1,128], index: 2, kind: input, shape index: {}]   ;;  %s462_s3 = inlined_call_operand.hbm [shape: bf16[128,128], index: 3, kind: input, shape index: {}]   ;;  %s463_s4 = inlined_call_operand.vmem [shape: f32[1,128], index: 4, kind: input, shape index: {}]   ;;  %s464_s5 = inlined_call_operand.hbm [shape: f32[8,128], index: 5, kind: output, shape index: {}]  }
   0x1   :  { %11 = vsyncpa [#allocation6], 0 }
   0x2   :  { %12 = vsyncpa [#allocation4], 0  ;;  %s403_s18 = smov [#allocation5]  }
   0x3   :  { %s28_s19 = sshll.u32 %s403_s18, 4  ;;  %s29_s19 = int_to_ptr.vmem [resolvable:$true] %s28_s19 }
   0x4   :  { %s325_s20 = scalar_lea.vmem %s29_s19, 128  ;;  %p330_p1 = scmp.lt.s32.totalorder %s29_s19, %s29_s19 }
   0x5   :  { %p326_p0 = scmp.ne.s32.totalorder %s29_s19, %s325_s20  ;;  %p331_p2 = scmp.lt.s32.totalorder %s325_s20, %s325_s20 }
   0x7   :  { %p332_p3 = por %p331_p2, %p330_p1 }
   0x9   :  { %p333_p4 = pnand %p332_p3, %p326_p0 }
   0xb   :  { %336 = shalt.err (!%p333_p4)
}
   0xc   :  { %s404_s21 = smov 64   ;;  %s405_s22 = smov 4  }
   0xd   :  { %34 = dma.hbm_to_vmem [thread:$0]  %s460_s1, 128, %s29_s19, [#allocation6], %s404_s21, %s404_s21, %s405_s22  }
   0xe   :  { %s406_s25 = smov [#allocation2]   ;;  %s407_s27 = smov [#allocation7]  }
   0xf   :  { %s19_s26 = sshll.u32 %s406_s25, 4  ;;  %s42_s28 = sshll.u32 %s407_s27, 4  ;;  %s20_s26 = int_to_ptr.vmem [resolvable:$true] %s19_s26  ;;  %s43_s28 = int_to_ptr.vmem [resolvable:$true] %s42_s28 }
  0x10   :  { %s345_s29 = scalar_lea.vmem %s20_s26, 64  ;;  %p350_p6 = scmp.lt.s32.totalorder %s20_s26, %s20_s26 }
  0x11   :  { %p346_p5 = scmp.ne.s32.totalorder %s20_s26, %s345_s29  ;;  %p351_p7 = scmp.lt.s32.totalorder %s345_s29, %s345_s29 }
  0x13   :  { %p352_p8 = por %p351_p7, %p350_p6 }
  0x15   :  { %p353_p9 = pnand %p352_p8, %p346_p5 }
  0x17   :  { %356 = shalt.err (!%p353_p9)
}
  0x18   :  { %22 = dma.hbm_to_vmem [thread:$0]  %s459_s0, 64, %s20_s26, [#allocation3]  }
  0x19   :  { %s365_s7 = scalar_lea.vmem %s43_s28, 1024  ;;  %p370_p11 = scmp.lt.s32.totalorder %s43_s28, %s43_s28 }
  0x1a   :  { %p366_p10 = scmp.ne.s32.totalorder %s43_s28, %s365_s7  ;;  %p371_p12 = scmp.lt.s32.totalorder %s365_s7, %s365_s7 }
  0x1c   :  { %p372_p13 = por %p371_p12, %p370_p11 }
  0x1e   :  { %p373_p0 = pnand %p372_p13, %p366_p10 }
  0x20   :  { %376 = shalt.err (!%p373_p0)
}
  0x21   :  { %48 = dma.hbm_to_vmem [thread:$0]  %s462_s3, 1024, %s43_s28, [#allocation6], %s404_s21, %s404_s21, %s405_s22  }
  0x22   :  { %397 = dma.done.wait [#allocation3], 64  }
  0x23   :  { %398 = vsyncadd [#allocation3], 4294967232 }
  0x24   :  { %399 = dma.done.wait [#allocation6], 1152  }
  0x25   :  { %400 = vsyncadd [#allocation6], 4294966144  ;;  %v408_v0 = vmov 0.0   ;;  %vm409_vm0 = vmmov 0   ;;  %v308_v1 = vld [vmem:[#allocation5] sm:$0xff]   ;;  %vm77_vm1 = vcmask 130048  }
  0x26   :  { %274 = vmatprep.subr.bf16.mxu0 %v408_v0  ;;  %276 = vmatprep.mubr.msk.bf16.mxu0 %vm409_vm0, %v408_v0  ;;  %v61_v2 = vld [vmem:[#allocation2] sm:$0xf]  ;;  %v309_v3 = vld [vmem:[#allocation7 + $0x38] sm:$0xff]   ;;  %v311_v5 = vld [vmem:[#allocation7 + $0x28] sm:$0xff]   ;;  %s410_s11 = smov [#allocation8]  }
  0x27   :  { %280 = vmatprep.subr.bf16.mxu1 %v408_v0  ;;  %296 = vmatprep.mubr.msk.bf16.mxu1 %vm409_vm0, %v408_v0  ;;  %v310_v4 = vld [vmem:[#allocation7 + $0x30] sm:$0xff]   ;;  %v312_v6 = vld [vmem:[#allocation7 + $0x20] sm:$0xff]   ;;  %v313_v7 = vld [vmem:[#allocation7 + $0x18] sm:$0xff]   ;;  %s241_s12 = sshll.u32 %s410_s11, 4  ;;  %s242_s12 = int_to_ptr.vmem [resolvable:$true] %s241_s12 }
  0x28   :  { %275 = vmatpush3.bf16.msra.mxu0 %v308_v1  ;;  %281 = vmatpush3.bf16.msra.mxu1 %v309_v3  ;;  %v314_v8 = vld [vmem:[#allocation7 + $0x10] sm:$0xff]   ;;  %v315_v9 = vld [vmem:[#allocation7 + $0x8] sm:$0xff]   ;;  %v316_v10 = vld [vmem:[#allocation7] sm:$0xff]   ;;  %p382_p2 = scmp.lt.s32.totalorder %s242_s12, %s242_s12 }
  0x29   :  { %282 = vmatprep.subr.bf16.mxu1 %v408_v0  ;;  %v251_v11 = vld [vmem:[%s461_s2] ss:$0 sm:$0xff]  ;;  %s377_s2 = scalar_lea.vmem %s242_s12, 128 }
  0x2a   :  { %v254_v19 = vld [vmem:[%s463_s4] ss:$0 sm:$0xff]  ;;  %p378_p1 = scmp.ne.s32.totalorder %s242_s12, %s377_s2  ;;  %p383_p3 = scmp.lt.s32.totalorder %s377_s2, %s377_s2 }
  0x2b   :  { %277 = vmatmul.mubr.msk.bf16.vlgmr.msra.gmra.mxu0 %vm77_vm1, %v61_v2 }
  0x2c   :  { %283 = vmatpush3.bf16.msra.mxu1 %v310_v4  ;;  %p384_p4 = por %p383_p3, %p382_p2 }
  0x2d   :  { %284 = vmatprep.subr.bf16.mxu1 %v408_v0 }
  0x2e   :  { %p385_p5 = pnand %p384_p4, %p378_p1 }
  0x30   :  { %285 = vmatpush3.bf16.msra.mxu1 %v311_v5 }
  0x31   :  { %286 = vmatprep.subr.bf16.mxu1 %v408_v0 }
  0x34   :  { %287 = vmatpush3.bf16.msra.mxu1 %v312_v6 }
  0x35   :  { %288 = vmatprep.subr.bf16.mxu1 %v408_v0 }
  0x38   :  { %289 = vmatpush3.bf16.msra.mxu1 %v313_v7 }
  0x39   :  { %290 = vmatprep.subr.bf16.mxu1 %v408_v0 }
  0x3c   :  { %291 = vmatpush3.bf16.msra.mxu1 %v314_v8 }
  0x3d   :  { %292 = vmatprep.subr.bf16.mxu1 %v408_v0 }
  0x40   :  { %293 = vmatpush3.bf16.msra.mxu1 %v315_v9 }
  0x41   :  { %294 = vmatprep.subr.bf16.mxu1 %v408_v0 }
  0x44   :  { %295 = vmatpush3.bf16.msra.mxu1 %v316_v10 }
  0xeb   :  { %v115_v12 = vpop.f32.mrf.mxu0 }
  0xec   :  { %v116_v13 = vadd.f32 %v251_v11, %v115_v12 }
  0xed   :  { %v278_v14 = vpop.f32.mrf.mxu0 }
  0xee   :  { %v121_v15 = vmax.f32 %v116_v13, 0.0 }
  0xef   :  { %v118_v16 = vpop.f32.mrf.mxu0 }
  0xf0   :  { %v122_v17 = vpack.c.bf16 %v121_v15, %v121_v15 }
  0xf1   :  { %v279_v18 = vpop.f32.mrf.mxu0 }
  0xf2   :  { %297 = vmatmul.mubr.bf16.vlgmr.msra.gmra.mxu1 %v122_v17 }
 0x1b2   :  { %v228_v20 = vpop.f32.mrf.mxu1 }
 0x1b3   :  { %v229_v21 = vadd.f32 %v254_v19, %v228_v20 }
 0x1b4   :  { %v298_v22 = vpop.f32.mrf.mxu1 }
 0x1b5   :  { %234 = vst [vmem:[#allocation8] sm:$0xff] %v229_v21 }
 0x1b6   :  { %v231_v23 = vpop.f32.mrf.mxu1 }
 0x1b7   :  { %388 = shalt.err (!%p385_p5)
}
 0x1b8   :  { %244 = dma.vmem_to_hbm [thread:$0]  %s242_s12, 128, %s464_s5, [#allocation4]   ;;  %v299_v24 = vpop.f32.mrf.mxu1 }
 0x1b9   :  { %401 = dma.done.wait [#allocation4], 128  }
 0x1ba   :  { %402 = vsyncadd [#allocation4], 4294967168 }
 0x1bb   :  { %248 = vsyncpa [#allocation3], 1 }
 0x1bc   :  { %249 = vsyncpa [#allocation6], 1 }
 0x1bd   :  { %250 = vsyncpa [#allocation4], 1 }

// kernel: tpu_custom_call.1
= control target key start
LH: loop header
LB: loop body
LE: loop exit
PB: predicated region body
PF: predicated region fallthrough
CT: control target
= control target key end

     0   :  { %10 = vsyncpa [#allocation3], 0  ;;  %s459_s0 = inlined_call_operand.hbm [shape: bf16[8,16], index: 0, kind: input, shape index: {}]   ;;  %s460_s1 = inlined_call_operand.hbm [shape: bf16[16,128], index: 1, kind: input, shape index: {}]   ;;  %s461_s2 = inlined_call_operand.vmem [shape: f32[1,128], index: 2, kind: input, shape index: {}]   ;;  %s462_s3 = inlined_call_operand.hbm [shape: bf16[128,128], index: 3, kind: input, shape index: {}]   ;;  %s463_s4 = inlined_call_operand.vmem [shape: f32[1,128], index: 4, kind: input, shape index: {}]   ;;  %s464_s5 = inlined_call_operand.hbm [shape: f32[8,128], index: 5, kind: output, shape index: {}]  }
   0x1   :  { %11 = vsyncpa [#allocation6], 0 }
   0x2   :  { %12 = vsyncpa [#allocation4], 0  ;;  %s403_s18 = smov [#allocation5]  }
   0x3   :  { %s28_s19 = sshll.u32 %s403_s18, 4  ;;  %s29_s19 = int_to_ptr.vmem [resolvable:$true] %s28_s19 }
   0x4   :  { %s325_s20 = scalar_lea.vmem %s29_s19, 128  ;;  %p330_p1 = scmp.lt.s32.totalorder %s29_s19, %s29_s19 }
   0x5   :  { %p326_p0 = scmp.ne.s32.totalorder %s29_s19, %s325_s20  ;;  %p331_p2 = scmp.lt.s32.totalorder %s325_s20, %s325_s20 }
   0x7   :  { %p332_p3 = por %p331_p2, %p330_p1 }
   0x9   :  { %p333_p4 = pnand %p332_p3, %p326_p0 }
   0xb   :  { %336 = shalt.err (!%p333_p4)
}
   0xc   :  { %s404_s21 = smov 64   ;;  %s405_s22 = smov 4  }
   0xd   :  { %34 = dma.hbm_to_vmem [thread:$0]  %s460_s1, 128, %s29_s19, [#allocation6], %s404_s21, %s404_s21, %s405_s22  }
   0xe   :  { %s406_s25 = smov [#allocation2]   ;;  %s407_s27 = smov [#allocation7]  }
   0xf   :  { %s19_s26 = sshll.u32 %s406_s25, 4  ;;  %s42_s28 = sshll.u32 %s407_s27, 4  ;;  %s20_s26 = int_to_ptr.vmem [resolvable:$true] %s19_s26  ;;  %s43_s28 = int_to_ptr.vmem [resolvable:$true] %s42_s28 }
  0x10   :  { %s345_s29 = scalar_lea.vmem %s20_s26, 64  ;;  %p350_p6 = scmp.lt.s32.totalorder %s20_s26, %s20_s26 }
  0x11   :  { %p346_p5 = scmp.ne.s32.totalorder %s20_s26, %s345_s29  ;;  %p351_p7 = scmp.lt.s32.totalorder %s345_s29, %s345_s29 }
  0x13   :  { %p352_p8 = por %p351_p7, %p350_p6 }
  0x15   :  { %p353_p9 = pnand %p352_p8, %p346_p5 }
  0x17   :  { %356 = shalt.err (!%p353_p9)
}
  0x18   :  { %22 = dma.hbm_to_vmem [thread:$0]  %s459_s0, 64, %s20_s26, [#allocation3]  }
  0x19   :  { %s365_s7 = scalar_lea.vmem %s43_s28, 1024  ;;  %p370_p11 = scmp.lt.s32.totalorder %s43_s28, %s43_s28 }
  0x1a   :  { %p366_p10 = scmp.ne.s32.totalorder %s43_s28, %s365_s7  ;;  %p371_p12 = scmp.lt.s32.totalorder %s365_s7, %s365_s7 }
  0x1c   :  { %p372_p13 = por %p371_p12, %p370_p11 }
  0x1e   :  { %p373_p0 = pnand %p372_p13, %p366_p10 }
  0x20   :  { %376 = shalt.err (!%p373_p0)
}
  0x21   :  { %48 = dma.hbm_to_vmem [thread:$0]  %s462_s3, 1024, %s43_s28, [#allocation6], %s404_s21, %s404_s21, %s405_s22  }
  0x22   :  { %397 = dma.done.wait [#allocation3], 64  }
  0x23   :  { %398 = vsyncadd [#allocation3], 4294967232 }
  0x24   :  { %399 = dma.done.wait [#allocation6], 1152  }
  0x25   :  { %400 = vsyncadd [#allocation6], 4294966144  ;;  %v408_v0 = vmov 0.0   ;;  %vm409_vm0 = vmmov 0   ;;  %v308_v1 = vld [vmem:[#allocation5] sm:$0xff]   ;;  %vm77_vm1 = vcmask 130048  }
  0x26   :  { %274 = vmatprep.subr.bf16.mxu0 %v408_v0  ;;  %276 = vmatprep.mubr.msk.bf16.mxu0 %vm409_vm0, %v408_v0  ;;  %v61_v2 = vld [vmem:[#allocation2] sm:$0xf]  ;;  %v309_v3 = vld [vmem:[#allocation7 + $0x38] sm:$0xff]   ;;  %v311_v5 = vld [vmem:[#allocation7 + $0x28] sm:$0xff]   ;;  %s410_s11 = smov [#allocation8]  }
  0x27   :  { %280 = vmatprep.subr.bf16.mxu1 %v408_v0  ;;  %296 = vmatprep.mubr.msk.bf16.mxu1 %vm409_vm0, %v408_v0  ;;  %v310_v4 = vld [vmem:[#allocation7 + $0x30] sm:$0xff]   ;;  %v312_v6 = vld [vmem:[#allocation7 + $0x20] sm:$0xff]   ;;  %v313_v7 = vld [vmem:[#allocation7 + $0x18] sm:$0xff]   ;;  %s241_s12 = sshll.u32 %s410_s11, 4  ;;  %s242_s12 = int_to_ptr.vmem [resolvable:$true] %s241_s12 }
  0x28   :  { %275 = vmatpush3.bf16.msra.mxu0 %v308_v1  ;;  %281 = vmatpush3.bf16.msra.mxu1 %v309_v3  ;;  %v314_v8 = vld [vmem:[#allocation7 + $0x10] sm:$0xff]   ;;  %v315_v9 = vld [vmem:[#allocation7 + $0x8] sm:$0xff]   ;;  %v316_v10 = vld [vmem:[#allocation7] sm:$0xff]   ;;  %p382_p2 = scmp.lt.s32.totalorder %s242_s12, %s242_s12 }
  0x29   :  { %282 = vmatprep.subr.bf16.mxu1 %v408_v0  ;;  %v251_v11 = vld [vmem:[%s461_s2] ss:$0 sm:$0xff]  ;;  %s377_s2 = scalar_lea.vmem %s242_s12, 128 }
  0x2a   :  { %v254_v19 = vld [vmem:[%s463_s4] ss:$0 sm:$0xff]  ;;  %p378_p1 = scmp.ne.s32.totalorder %s242_s12, %s377_s2  ;;  %p383_p3 = scmp.lt.s32.totalorder %s377_s2, %s377_s2 }
  0x2b   :  { %277 = vmatmul.mubr.msk.bf16.vlgmr.msra.gmra.mxu0 %vm77_vm1, %v61_v2 }
  0x2c   :  { %283 = vmatpush3.bf16.msra.mxu1 %v310_v4  ;;  %p384_p4 = por %p383_p3, %p382_p2 }
  0x2d   :  { %284 = vmatprep.subr.bf16.mxu1 %v408_v0 }
  0x2e   :  { %p385_p5 = pnand %p384_p4, %p378_p1 }
  0x30   :  { %285 = vmatpush3.bf16.msra.mxu1 %v311_v5 }
  0x31   :  { %286 = vmatprep.subr.bf16.mxu1 %v408_v0 }
  0x34   :  { %287 = vmatpush3.bf16.msra.mxu1 %v312_v6 }
  0x35   :  { %288 = vmatprep.subr.bf16.mxu1 %v408_v0 }
  0x38   :  { %289 = vmatpush3.bf16.msra.mxu1 %v313_v7 }
  0x39   :  { %290 = vmatprep.subr.bf16.mxu1 %v408_v0 }
  0x3c   :  { %291 = vmatpush3.bf16.msra.mxu1 %v314_v8 }
  0x3d   :  { %292 = vmatprep.subr.bf16.mxu1 %v408_v0 }
  0x40   :  { %293 = vmatpush3.bf16.msra.mxu1 %v315_v9 }
  0x41   :  { %294 = vmatprep.subr.bf16.mxu1 %v408_v0 }
  0x44   :  { %295 = vmatpush3.bf16.msra.mxu1 %v316_v10 }
  0xeb   :  { %v115_v12 = vpop.f32.mrf.mxu0 }
  0xec   :  { %v116_v13 = vadd.f32 %v251_v11, %v115_v12 }
  0xed   :  { %v278_v14 = vpop.f32.mrf.mxu0 }
  0xee   :  { %v121_v15 = vmax.f32 %v116_v13, 0.0 }
  0xef   :  { %v118_v16 = vpop.f32.mrf.mxu0 }
  0xf0   :  { %v122_v17 = vpack.c.bf16 %v121_v15, %v121_v15 }
  0xf1   :  { %v279_v18 = vpop.f32.mrf.mxu0 }
  0xf2   :  { %297 = vmatmul.mubr.bf16.vlgmr.msra.gmra.mxu1 %v122_v17 }
 0x1b2   :  { %v228_v20 = vpop.f32.mrf.mxu1 }
 0x1b3   :  { %v229_v21 = vadd.f32 %v254_v19, %v228_v20 }
 0x1b4   :  { %v298_v22 = vpop.f32.mrf.mxu1 }
 0x1b5   :  { %234 = vst [vmem:[#allocation8] sm:$0xff] %v229_v21 }
 0x1b6   :  { %v231_v23 = vpop.f32.mrf.mxu1 }
 0x1b7   :  { %388 = shalt.err (!%p385_p5)
}
 0x1b8   :  { %244 = dma.vmem_to_hbm [thread:$0]  %s242_s12, 128, %s464_s5, [#allocation4]   ;;  %v299_v24 = vpop.f32.mrf.mxu1 }
 0x1b9   :  { %401 = dma.done.wait [#allocation4], 128  }
 0x1ba   :  { %402 = vsyncadd [#allocation4], 4294967168 }
 0x1bb   :  { %248 = vsyncpa [#allocation3], 1 }
 0x1bc   :  { %249 = vsyncpa [#allocation6], 1 }
 0x1bd   :  { %250 = vsyncpa [#allocation4], 1 }

</bundles_post_ra>
